<compile_context>
chip_gen: v7x
topology: tpu7x:2x2x1
jax: 0.10.0
libtpu: 0.0.40
codegen_flags: <defaults>
</compile_context>

<pallas_src>
import functools

import jax
import jax.numpy as jnp
from jax.experimental import pallas as pl
from jax.experimental.pallas import tpu as pltpu


def _round_up(x, m):
    return ((x + m - 1) // m) * m


# ----------------------------------------------------------------------------
# Kernel: whole DoubleConv on one lane-folded group of images
# ----------------------------------------------------------------------------
def _up_double_conv_kernel(ks, wp, lead,
                           x_ref, w1_ref, b1_ref, w2_ref, b2_ref,
                           w3_ref, b3_ref, mask_ref,
                           o_ref, a1_ref, a3_ref, y2s_ref):
    """Fused conv(ks)->ReLU->conv1x1->ReLU->+res->conv(ks)->ReLU->+res+res.

    x_ref   : (1, Cinp, E + 2*lead) bf16  padded/flattened/batch-folded window
    w1_ref  : (Cpad, ks*ks*Cinp)    bf16  conv1 weights, rows o, cols (dy,dx,c)
    w2_ref  : (Cpad, Cpad)          bf16  1x1 conv weights
    w3_ref  : (Cpad, ks*ks*Cpad)    bf16  conv3 weights
    b*_ref  : (Cpad, 1)             f32   biases (zero on padded channels)
    mask_ref: (1, E)                f32   1 on the HxW interior of each slot
    o_ref   : (Cpad, E)             f32   output on the padded/folded grid
    a1_ref  : (ks*ks*Cinp, E)       bf16  im2col scratch for conv1
    a3_ref  : (ks*ks*Cpad, E)       bf16  im2col scratch for conv3
    y2s_ref : (Cpad, E + 2*lead)    bf16  staged conv3 input (guards + interior)
    """
    p = ks // 2
    cin = x_ref.shape[1]
    cpad, e = o_ref.shape

    # conv1 (ks x ks) -> ReLU: each tap shift done ONCE into the im2col stack,
    # then a single MXU matmul with K = ks*ks*Cinp.  Dropout = identity (eval).
    xwin = x_ref[0]                                     # (cin, e + 2*lead) bf16
    for t in range(ks * ks):
        dy, dx = divmod(t, ks)
        off = lead + (dy - p) * wp + (dx - p)           # static lane offset
        a1_ref[t * cin:(t + 1) * cin, :] = xwin[:, off:off + e]
    y1 = jnp.maximum(
        jnp.dot(w1_ref[...], a1_ref[...], preferred_element_type=jnp.float32)
        + b1_ref[...], 0.0)                             # (cpad, e) f32

    # conv2 (1x1) -> ReLU -> += y1
    z2 = jnp.dot(w2_ref[...], y1.astype(jnp.bfloat16),
                 preferred_element_type=jnp.float32)
    y2 = jnp.maximum(z2 + b2_ref[...], 0.0) + y1

    # Stage conv3 input: zero only the two 128-lane guard strips (cheap; real
    # interior taps never read them), store the masked interior full-width so
    # PyTorch's zero padding is reproduced and no stale lanes can leak.
    y2s_ref[:, 0:lead] = jnp.zeros((cpad, lead), y2s_ref.dtype)
    y2s_ref[:, lead + e:lead + e + lead] = jnp.zeros((cpad, lead), y2s_ref.dtype)
    y2s_ref[:, lead:lead + e] = (y2 * mask_ref[...]).astype(y2s_ref.dtype)

    # conv3 (ks x ks) -> ReLU -> += y1 -> += y2 : same im2col + ONE matmul.
    y2w = y2s_ref[...]                                  # (cpad, e + 2*lead) bf16
    for t in range(ks * ks):
        dy, dx = divmod(t, ks)
        off = lead + (dy - p) * wp + (dx - p)
        a3_ref[t * cpad:(t + 1) * cpad, :] = y2w[:, off:off + e]
    y3 = jnp.maximum(
        jnp.dot(w3_ref[...], a3_ref[...], preferred_element_type=jnp.float32)
        + b3_ref[...], 0.0) + y1 + y2
    o_ref[...] = y3


# ----------------------------------------------------------------------------
# Wrapper: fused XLA prep chain + single pallas_call
# ----------------------------------------------------------------------------
def up_forward(params, x1, x2, ks, grid_blocks=None):
    """`Up.forward` (bilinear=False): upsample x1, pad to x2, concat, DoubleConv."""
    B, C1, H1, W1 = x1.shape
    Cmid = C1 // 2
    H, W = x2.shape[2], x2.shape[3]
    Cin = C1                                   # Cmid (x2) + Cmid (up(x1))
    Cout = params["w1"].shape[0]

    p = ks // 2
    Hp, Wp = H + 2 * p, W + 2 * p
    n0 = Hp * Wp                               # flat padded-grid length per image
    S = _round_up(n0, 128)                     # lane-aligned per-image slot
    halo = p * (Wp + 1)
    lead = max(128, _round_up(halo, 128))      # 128-aligned guard >= halo

    if grid_blocks is None:
        grid_blocks = 2 if (B % 2 == 0 and B >= 2) else 1   # feed both v7x TCs
    G = grid_blocks
    bp = B // G                                # images per grid step
    E = bp * S                                 # eval lanes per step (mult of 128)

    Cinp = _round_up(Cin, 8)                   # sublane-full channel padding
    Cpad = _round_up(Cout, 8)

    # ---- ONE XLA prep chain: ConvTranspose2d(k=2,s=2) as einsum + pixel
    # ---- shuffle, pad to x2, channel concat, conv zero-pad, flatten, slot pad,
    # ---- batch fold into lanes, guard margins, bf16 cast, per-step windows.
    rb = lambda v: v.astype(jnp.bfloat16).astype(jnp.float32)
    up = jnp.einsum("bcyx,cdij->bdyixj", rb(x1), rb(params["up_w"]))
    up = up.reshape(B, Cmid, 2 * H1, 2 * W1) + params["up_b"].reshape(1, Cmid, 1, 1)
    dY, dX = H - up.shape[2], W - up.shape[3]
    up = jnp.pad(up, ((0, 0), (0, 0),
                      (dY // 2, dY - dY // 2), (dX // 2, dX - dX // 2)))
    x = jnp.concatenate([x2, up], axis=1)                      # (B, Cin, H, W)

    xpad = jnp.pad(x, ((0, 0), (0, Cinp - Cin), (p, p), (p, p)))
    xpad = xpad.reshape(B, Cinp, n0)
    xpad = jnp.pad(xpad, ((0, 0), (0, 0), (0, S - n0)))        # (B, Cinp, S)
    xf = jnp.transpose(xpad, (1, 0, 2)).reshape(Cinp, B * S)
    xf = jnp.pad(xf, ((0, 0), (lead, lead))).astype(jnp.bfloat16)
    # Overlapping per-step windows -> every in-kernel lane offset is static.
    xw = jnp.stack([xf[:, g * E:g * E + E + 2 * lead] for g in range(G)], axis=0)

    # ---- weights in "rows = out-channel, cols = (dy, dx, in-channel)" form.
    w1f = jnp.transpose(params["w1"], (0, 2, 3, 1))            # (O, ks, ks, Cin)
    w1f = jnp.pad(w1f, ((0, Cpad - Cout), (0, 0), (0, 0), (0, Cinp - Cin)))
    w1f = w1f.reshape(Cpad, ks * ks * Cinp).astype(jnp.bfloat16)
    w2f = jnp.pad(params["w2"][:, :, 0, 0],
                  ((0, Cpad - Cout), (0, Cpad - Cout))).astype(jnp.bfloat16)
    w3f = jnp.transpose(params["w3"], (0, 2, 3, 1))            # (O, ks, ks, O)
    w3f = jnp.pad(w3f, ((0, Cpad - Cout), (0, 0), (0, 0), (0, Cpad - Cout)))
    w3f = w3f.reshape(Cpad, ks * ks * Cpad).astype(jnp.bfloat16)
    b1 = jnp.pad(params["b1"], (0, Cpad - Cout)).reshape(Cpad, 1)
    b2 = jnp.pad(params["b2"], (0, Cpad - Cout)).reshape(Cpad, 1)
    b3 = jnp.pad(params["b3"], (0, Cpad - Cout)).reshape(Cpad, 1)

    # Interior mask (constant, XLA-folded): 1 on the HxW region of each slot.
    mask1 = jnp.pad(jnp.ones((H, W), jnp.float32), ((p, p), (p, p))).reshape(n0)
    mask1 = jnp.pad(mask1, (0, S - n0))
    mask = jnp.tile(mask1, B).reshape(1, B * S)

    kernel = functools.partial(_up_double_conv_kernel, ks, Wp, lead)
    out = pl.pallas_call(
        kernel,
        out_shape=jax.ShapeDtypeStruct((Cpad, B * S), jnp.float32),
        grid=(G,),
        in_specs=[
            pl.BlockSpec((1, Cinp, E + 2 * lead), lambda g: (g, 0, 0)),  # x window
            pl.BlockSpec((Cpad, ks * ks * Cinp), lambda g: (0, 0)),      # w1
            pl.BlockSpec((Cpad, 1), lambda g: (0, 0)),                   # b1
            pl.BlockSpec((Cpad, Cpad), lambda g: (0, 0)),                # w2
            pl.BlockSpec((Cpad, 1), lambda g: (0, 0)),                   # b2
            pl.BlockSpec((Cpad, ks * ks * Cpad), lambda g: (0, 0)),      # w3
            pl.BlockSpec((Cpad, 1), lambda g: (0, 0)),                   # b3
            pl.BlockSpec((1, E), lambda g: (0, g)),                      # mask
        ],
        out_specs=pl.BlockSpec((Cpad, E), lambda g: (0, g)),
        scratch_shapes=[
            pltpu.VMEM((ks * ks * Cinp, E), jnp.bfloat16),   # conv1 im2col
            pltpu.VMEM((ks * ks * Cpad, E), jnp.bfloat16),   # conv3 im2col
            pltpu.VMEM((Cpad, E + 2 * lead), jnp.bfloat16),  # staged conv3 input
        ],
        compiler_params=pltpu.CompilerParams(
            dimension_semantics=("parallel",)),
    )(xw, w1f, b1, w2f, b2, w3f, b3, mask)

    # Crop channels + per-image slots + padded border, back to NCHW.
    out = out.reshape(Cpad, B, S)[:Cout, :, :n0].reshape(Cout, B, Hp, Wp)
    out = out[:, :, p:p + H, p:p + W]
    return jnp.transpose(out, (1, 0, 2, 3))


# ----------------------------------------------------------------------------
# Plain-JAX reference (same numerics: bf16 matmul inputs, f32 accumulation)
# ----------------------------------------------------------------------------
def up_reference(params, x1, x2, ks):
    def _r(v):
        return v.astype(jnp.bfloat16).astype(jnp.float32)

    B, Cin, H1, W1 = x1.shape
    Cmid = Cin // 2
    up = jnp.zeros((B, Cmid, 2 * H1, 2 * W1), jnp.float32)
    for ky in range(2):
        for kx in range(2):
            c = jnp.einsum("bcyx,cd->bdyx", _r(x1),
                           _r(params["up_w"][:, :, ky, kx]))
            up = up.at[:, :, ky::2, kx::2].set(c)
    up = up + params["up_b"].reshape(1, Cmid, 1, 1)

    dY = x2.shape[2] - up.shape[2]
    dX = x2.shape[3] - up.shape[3]
    up = jnp.pad(up, ((0, 0), (0, 0),
                      (dY // 2, dY - dY // 2), (dX // 2, dX - dX // 2)))
    x = jnp.concatenate([x2, up], axis=1)

    def conv(v, w, b, pad):
        o = jax.lax.conv_general_dilated(
            _r(v), _r(w), window_strides=(1, 1),
            padding=[(pad, pad), (pad, pad)],
            dimension_numbers=("NCHW", "OIHW", "NCHW"))
        return o + b.reshape(1, -1, 1, 1)

    p = ks // 2
    y1 = jax.nn.relu(conv(x, params["w1"], params["b1"], p))     # dropout = identity
    y2 = jax.nn.relu(conv(y1, params["w2"], params["b2"], 0)) + y1
    y3 = jax.nn.relu(conv(y2, params["w3"], params["b3"], p)) + y1 + y2
    return y3


# ----------------------------------------------------------------------------
# Deterministic synthetic parameters (PyTorch weight layouts)
# ----------------------------------------------------------------------------
def init_params(key, in_channels, out_channels, ks):
    cmid = in_channels // 2
    k = jax.random.split(key, 8)

    def conv_w(kk, cout, cin, kh, kw):
        fan_in = cin * kh * kw
        return jax.random.normal(kk, (cout, cin, kh, kw), jnp.float32) / jnp.sqrt(fan_in)

    return {
        # ConvTranspose2d(in, in//2, 2, 2): torch weight layout (Cin, Cout, kH, kW)
        "up_w": jax.random.normal(k[0], (in_channels, cmid, 2, 2), jnp.float32)
                / jnp.sqrt(4.0 * in_channels),
        "up_b": 0.05 * jax.random.normal(k[1], (cmid,), jnp.float32),
        "w1": conv_w(k[2], out_channels, in_channels, ks, ks),
        "b1": 0.05 * jax.random.normal(k[3], (out_channels,), jnp.float32),
        "w2": conv_w(k[4], out_channels, out_channels, 1, 1),
        "b2": 0.05 * jax.random.normal(k[5], (out_channels,), jnp.float32),
        "w3": conv_w(k[6], out_channels, out_channels, ks, ks),
        "b3": 0.05 * jax.random.normal(k[7], (out_channels,), jnp.float32),
    }


# ----------------------------------------------------------------------------
if __name__ == "__main__":
    in_channels, out_channels, ks, dropout = 8, 4, 3, 0.5
    B, H1, W1 = 2, 8, 8                     # x1 is the low-res feature map

    key = jax.random.PRNGKey(0)
    kp, k1, k2 = jax.random.split(key, 3)
    params = init_params(kp, in_channels, out_channels, ks)

    x1 = jax.random.normal(k1, (B, in_channels, H1, W1), jnp.float32)
    x2 = jax.random.normal(k2, (B, in_channels // 2, 2 * H1, 2 * W1), jnp.float32)

    fwd = jax.jit(functools.partial(up_forward, ks=ks))
    out = jax.block_until_ready(fwd(params, x1, x2))

    assert out.shape == (B, out_channels, 2 * H1, 2 * W1), out.shape
    assert bool(jnp.all(jnp.isfinite(out)))

    ref = jax.jit(functools.partial(up_reference, ks=ks))(params, x1, x2)
    err = float(jnp.max(jnp.abs(out - ref)))
    assert err < 3e-2, f"max abs err vs reference: {err}"

    print("KERNEL_OK")
</pallas_src>

<mosaic_0001>
module attributes {stable_mosaic.version = 11 : i64} {
  func.func @_up_double_conv_kernel(%arg0: i32, %arg1: memref<1x8x640xbf16, #tpu.memory_space<vmem>>, %arg2: memref<8x72xbf16, #tpu.memory_space<vmem>>, %arg3: memref<8x1xf32, #tpu.memory_space<vmem>>, %arg4: memref<8x8xbf16, #tpu.memory_space<vmem>>, %arg5: memref<8x1xf32, #tpu.memory_space<vmem>>, %arg6: memref<8x72xbf16, #tpu.memory_space<vmem>>, %arg7: memref<8x1xf32, #tpu.memory_space<vmem>>, %arg8: memref<1x384xf32, #tpu.memory_space<vmem>>, %arg9: memref<8x384xf32, #tpu.memory_space<vmem>>, %arg10: memref<72x384xbf16, #tpu.memory_space<vmem>>, %arg11: memref<72x384xbf16, #tpu.memory_space<vmem>>, %arg12: memref<8x640xbf16, #tpu.memory_space<vmem>>) attributes {dimension_semantics = [#tpu.dimension_semantics<parallel>], iteration_bounds = array<i64: 2>, scalar_prefetch = 0 : i64, scratch_operands = 3 : i64, tpu.core_type = #tpu.core_type<tc>, window_params = [{transform_indices = @transform_0, window_bounds = array<i64: 1, 8, 640>}, {pipeline_mode = #tpu.pipeline_mode<synchronous>, transform_indices = @transform_1, window_bounds = array<i64: 8, 72>}, {pipeline_mode = #tpu.pipeline_mode<synchronous>, transform_indices = @transform_2, window_bounds = array<i64: 8, 1>}, {pipeline_mode = #tpu.pipeline_mode<synchronous>, transform_indices = @transform_3, window_bounds = array<i64: 8, 8>}, {pipeline_mode = #tpu.pipeline_mode<synchronous>, transform_indices = @transform_4, window_bounds = array<i64: 8, 1>}, {pipeline_mode = #tpu.pipeline_mode<synchronous>, transform_indices = @transform_5, window_bounds = array<i64: 8, 72>}, {pipeline_mode = #tpu.pipeline_mode<synchronous>, transform_indices = @transform_6, window_bounds = array<i64: 8, 1>}, {transform_indices = @transform_7, window_bounds = array<i64: 1, 384>}, {transform_indices = @transform_8, window_bounds = array<i64: 8, 384>}]} {
    %c0 = arith.constant 0 : index
    %c0_0 = arith.constant 0 : index
    %c0_1 = arith.constant 0 : index
    %0 = vector.load %arg1[%c0, %c0_0, %c0_1] : memref<1x8x640xbf16, #tpu.memory_space<vmem>>, vector<1x8x640xbf16>
    %1 = vector.shape_cast %0 : vector<1x8x640xbf16> to vector<8x640xbf16>
    %2 = vector.extract_strided_slice %1 {offsets = [0, 109], sizes = [8, 384], strides = [1, 1]} : vector<8x640xbf16> to vector<8x384xbf16>
    %c0_2 = arith.constant 0 : index
    %c0_3 = arith.constant 0 : index
    %3 = vector.load %arg10[%c0_2, %c0_3] : memref<72x384xbf16, #tpu.memory_space<vmem>>, vector<8x384xbf16>
    tpu.vector_store %arg10[%c0_2, %c0_3], %2 {strides = array<i32>} : memref<72x384xbf16, #tpu.memory_space<vmem>>, vector<8x384xbf16>,
    %4 = vector.extract_strided_slice %1 {offsets = [0, 110], sizes = [8, 384], strides = [1, 1]} : vector<8x640xbf16> to vector<8x384xbf16>
    %c8 = arith.constant 8 : index
    %c0_4 = arith.constant 0 : index
    %5 = vector.load %arg10[%c8, %c0_4] : memref<72x384xbf16, #tpu.memory_space<vmem>>, vector<8x384xbf16>
    tpu.vector_store %arg10[%c8, %c0_4], %4 {strides = array<i32>} : memref<72x384xbf16, #tpu.memory_space<vmem>>, vector<8x384xbf16>,
    %6 = vector.extract_strided_slice %1 {offsets = [0, 111], sizes = [8, 384], strides = [1, 1]} : vector<8x640xbf16> to vector<8x384xbf16>
    %c16 = arith.constant 16 : index
    %c0_5 = arith.constant 0 : index
    %7 = vector.load %arg10[%c16, %c0_5] : memref<72x384xbf16, #tpu.memory_space<vmem>>, vector<8x384xbf16>
    tpu.vector_store %arg10[%c16, %c0_5], %6 {strides = array<i32>} : memref<72x384xbf16, #tpu.memory_space<vmem>>, vector<8x384xbf16>,
    %8 = vector.extract_strided_slice %1 {offsets = [0, 127], sizes = [8, 384], strides = [1, 1]} : vector<8x640xbf16> to vector<8x384xbf16>
    %c24 = arith.constant 24 : index
    %c0_6 = arith.constant 0 : index
    %9 = vector.load %arg10[%c24, %c0_6] : memref<72x384xbf16, #tpu.memory_space<vmem>>, vector<8x384xbf16>
    tpu.vector_store %arg10[%c24, %c0_6], %8 {strides = array<i32>} : memref<72x384xbf16, #tpu.memory_space<vmem>>, vector<8x384xbf16>,
    %10 = vector.extract_strided_slice %1 {offsets = [0, 128], sizes = [8, 384], strides = [1, 1]} : vector<8x640xbf16> to vector<8x384xbf16>
    %c32 = arith.constant 32 : index
    %c0_7 = arith.constant 0 : index
    %11 = vector.load %arg10[%c32, %c0_7] : memref<72x384xbf16, #tpu.memory_space<vmem>>, vector<8x384xbf16>
    tpu.vector_store %arg10[%c32, %c0_7], %10 {strides = array<i32>} : memref<72x384xbf16, #tpu.memory_space<vmem>>, vector<8x384xbf16>,
    %12 = vector.extract_strided_slice %1 {offsets = [0, 129], sizes = [8, 384], strides = [1, 1]} : vector<8x640xbf16> to vector<8x384xbf16>
    %c40 = arith.constant 40 : index
    %c0_8 = arith.constant 0 : index
    %13 = vector.load %arg10[%c40, %c0_8] : memref<72x384xbf16, #tpu.memory_space<vmem>>, vector<8x384xbf16>
    tpu.vector_store %arg10[%c40, %c0_8], %12 {strides = array<i32>} : memref<72x384xbf16, #tpu.memory_space<vmem>>, vector<8x384xbf16>,
    %14 = vector.extract_strided_slice %1 {offsets = [0, 145], sizes = [8, 384], strides = [1, 1]} : vector<8x640xbf16> to vector<8x384xbf16>
    %c48 = arith.constant 48 : index
    %c0_9 = arith.constant 0 : index
    %15 = vector.load %arg10[%c48, %c0_9] : memref<72x384xbf16, #tpu.memory_space<vmem>>, vector<8x384xbf16>
    tpu.vector_store %arg10[%c48, %c0_9], %14 {strides = array<i32>} : memref<72x384xbf16, #tpu.memory_space<vmem>>, vector<8x384xbf16>,
    %16 = vector.extract_strided_slice %1 {offsets = [0, 146], sizes = [8, 384], strides = [1, 1]} : vector<8x640xbf16> to vector<8x384xbf16>
    %c56 = arith.constant 56 : index
    %c0_10 = arith.constant 0 : index
    %17 = vector.load %arg10[%c56, %c0_10] : memref<72x384xbf16, #tpu.memory_space<vmem>>, vector<8x384xbf16>
    tpu.vector_store %arg10[%c56, %c0_10], %16 {strides = array<i32>} : memref<72x384xbf16, #tpu.memory_space<vmem>>, vector<8x384xbf16>,
    %18 = vector.extract_strided_slice %1 {offsets = [0, 147], sizes = [8, 384], strides = [1, 1]} : vector<8x640xbf16> to vector<8x384xbf16>
    %c64 = arith.constant 64 : index
    %c0_11 = arith.constant 0 : index
    %19 = vector.load %arg10[%c64, %c0_11] : memref<72x384xbf16, #tpu.memory_space<vmem>>, vector<8x384xbf16>
    tpu.vector_store %arg10[%c64, %c0_11], %18 {strides = array<i32>} : memref<72x384xbf16, #tpu.memory_space<vmem>>, vector<8x384xbf16>,
    %c0_12 = arith.constant 0 : index
    %c0_13 = arith.constant 0 : index
    %20 = vector.load %arg2[%c0_12, %c0_13] : memref<8x72xbf16, #tpu.memory_space<vmem>>, vector<8x72xbf16>
    %c0_14 = arith.constant 0 : index
    %c0_15 = arith.constant 0 : index
    %21 = vector.load %arg10[%c0_14, %c0_15] : memref<72x384xbf16, #tpu.memory_space<vmem>>, vector<72x384xbf16>
    %cst = arith.constant dense<0.000000e+00> : vector<8x384xf32>
    %22 = tpu.matmul %20, %21, %cst {dimension_numbers = #tpu.dot_dimension_numbers<[1], [0], [0], [1], [0, 0, 1, 1], [], []>} : vector<8x72xbf16>, vector<72x384xbf16>, vector<8x384xf32> -> vector<8x384xf32>
    %c0_16 = arith.constant 0 : index
    %c0_17 = arith.constant 0 : index
    %23 = vector.load %arg3[%c0_16, %c0_17] : memref<8x1xf32, #tpu.memory_space<vmem>>, vector<8x1xf32>
    %24 = vector.broadcast %23 : vector<8x1xf32> to vector<8x384xf32>
    %25 = arith.addf %22, %24 : vector<8x384xf32>
    %cst_18 = arith.constant 0.000000e+00 : f32
    %26 = vector.broadcast %cst_18 : f32 to vector<8x384xf32>
    %27 = arith.maximumf %25, %26 : vector<8x384xf32>
    %c0_19 = arith.constant 0 : index
    %c0_20 = arith.constant 0 : index
    %28 = vector.load %arg4[%c0_19, %c0_20] : memref<8x8xbf16, #tpu.memory_space<vmem>>, vector<8x8xbf16>
    %29 = arith.truncf %27 : vector<8x384xf32> to vector<8x384xbf16>
    %cst_21 = arith.constant dense<0.000000e+00> : vector<8x384xf32>
    %30 = tpu.matmul %28, %29, %cst_21 {dimension_numbers = #tpu.dot_dimension_numbers<[1], [0], [0], [1], [0, 0, 1, 1], [], []>} : vector<8x8xbf16>, vector<8x384xbf16>, vector<8x384xf32> -> vector<8x384xf32>
    %c0_22 = arith.constant 0 : index
    %c0_23 = arith.constant 0 : index
    %31 = vector.load %arg5[%c0_22, %c0_23] : memref<8x1xf32, #tpu.memory_space<vmem>>, vector<8x1xf32>
    %32 = vector.broadcast %31 : vector<8x1xf32> to vector<8x384xf32>
    %33 = arith.addf %30, %32 : vector<8x384xf32>
    %cst_24 = arith.constant 0.000000e+00 : f32
    %34 = vector.broadcast %cst_24 : f32 to vector<8x384xf32>
    %35 = arith.maximumf %33, %34 : vector<8x384xf32>
    %36 = arith.addf %35, %27 : vector<8x384xf32>
    %cst_25 = arith.constant 0.000000e+00 : bf16
    %37 = vector.broadcast %cst_25 : bf16 to vector<8x128xbf16>
    %c0_26 = arith.constant 0 : index
    %c0_27 = arith.constant 0 : index
    %38 = vector.load %arg12[%c0_26, %c0_27] : memref<8x640xbf16, #tpu.memory_space<vmem>>, vector<8x128xbf16>
    tpu.vector_store %arg12[%c0_26, %c0_27], %37 {strides = array<i32>} : memref<8x640xbf16, #tpu.memory_space<vmem>>, vector<8x128xbf16>,
    %cst_28 = arith.constant 0.000000e+00 : bf16
    %39 = vector.broadcast %cst_28 : bf16 to vector<8x128xbf16>
    %c0_29 = arith.constant 0 : index
    %c512 = arith.constant 512 : index
    %40 = vector.load %arg12[%c0_29, %c512] : memref<8x640xbf16, #tpu.memory_space<vmem>>, vector<8x128xbf16>
    tpu.vector_store %arg12[%c0_29, %c512], %39 {strides = array<i32>} : memref<8x640xbf16, #tpu.memory_space<vmem>>, vector<8x128xbf16>,
    %c0_30 = arith.constant 0 : index
    %c0_31 = arith.constant 0 : index
    %41 = vector.load %arg8[%c0_30, %c0_31] : memref<1x384xf32, #tpu.memory_space<vmem>>, vector<1x384xf32>
    %42 = vector.broadcast %41 : vector<1x384xf32> to vector<8x384xf32>
    %43 = arith.mulf %36, %42 : vector<8x384xf32>
    %44 = arith.truncf %43 : vector<8x384xf32> to vector<8x384xbf16>
    %c0_32 = arith.constant 0 : index
    %c128 = arith.constant 128 : index
    %45 = vector.load %arg12[%c0_32, %c128] : memref<8x640xbf16, #tpu.memory_space<vmem>>, vector<8x384xbf16>
    tpu.vector_store %arg12[%c0_32, %c128], %44 {strides = array<i32>} : memref<8x640xbf16, #tpu.memory_space<vmem>>, vector<8x384xbf16>,
    %c0_33 = arith.constant 0 : index
    %c0_34 = arith.constant 0 : index
    %46 = vector.load %arg12[%c0_33, %c0_34] : memref<8x640xbf16, #tpu.memory_space<vmem>>, vector<8x640xbf16>
    %47 = vector.extract_strided_slice %46 {offsets = [0, 109], sizes = [8, 384], strides = [1, 1]} : vector<8x640xbf16> to vector<8x384xbf16>
    %c0_35 = arith.constant 0 : index
    %c0_36 = arith.constant 0 : index
    %48 = vector.load %arg11[%c0_35, %c0_36] : memref<72x384xbf16, #tpu.memory_space<vmem>>, vector<8x384xbf16>
    tpu.vector_store %arg11[%c0_35, %c0_36], %47 {strides = array<i32>} : memref<72x384xbf16, #tpu.memory_space<vmem>>, vector<8x384xbf16>,
    %49 = vector.extract_strided_slice %46 {offsets = [0, 110], sizes = [8, 384], strides = [1, 1]} : vector<8x640xbf16> to vector<8x384xbf16>
    %c8_37 = arith.constant 8 : index
    %c0_38 = arith.constant 0 : index
    %50 = vector.load %arg11[%c8_37, %c0_38] : memref<72x384xbf16, #tpu.memory_space<vmem>>, vector<8x384xbf16>
    tpu.vector_store %arg11[%c8_37, %c0_38], %49 {strides = array<i32>} : memref<72x384xbf16, #tpu.memory_space<vmem>>, vector<8x384xbf16>,
    %51 = vector.extract_strided_slice %46 {offsets = [0, 111], sizes = [8, 384], strides = [1, 1]} : vector<8x640xbf16> to vector<8x384xbf16>
    %c16_39 = arith.constant 16 : index
    %c0_40 = arith.constant 0 : index
    %52 = vector.load %arg11[%c16_39, %c0_40] : memref<72x384xbf16, #tpu.memory_space<vmem>>, vector<8x384xbf16>
    tpu.vector_store %arg11[%c16_39, %c0_40], %51 {strides = array<i32>} : memref<72x384xbf16, #tpu.memory_space<vmem>>, vector<8x384xbf16>,
    %53 = vector.extract_strided_slice %46 {offsets = [0, 127], sizes = [8, 384], strides = [1, 1]} : vector<8x640xbf16> to vector<8x384xbf16>
    %c24_41 = arith.constant 24 : index
    %c0_42 = arith.constant 0 : index
    %54 = vector.load %arg11[%c24_41, %c0_42] : memref<72x384xbf16, #tpu.memory_space<vmem>>, vector<8x384xbf16>
    tpu.vector_store %arg11[%c24_41, %c0_42], %53 {strides = array<i32>} : memref<72x384xbf16, #tpu.memory_space<vmem>>, vector<8x384xbf16>,
    %55 = vector.extract_strided_slice %46 {offsets = [0, 128], sizes = [8, 384], strides = [1, 1]} : vector<8x640xbf16> to vector<8x384xbf16>
    %c32_43 = arith.constant 32 : index
    %c0_44 = arith.constant 0 : index
    %56 = vector.load %arg11[%c32_43, %c0_44] : memref<72x384xbf16, #tpu.memory_space<vmem>>, vector<8x384xbf16>
    tpu.vector_store %arg11[%c32_43, %c0_44], %55 {strides = array<i32>} : memref<72x384xbf16, #tpu.memory_space<vmem>>, vector<8x384xbf16>,
    %57 = vector.extract_strided_slice %46 {offsets = [0, 129], sizes = [8, 384], strides = [1, 1]} : vector<8x640xbf16> to vector<8x384xbf16>
    %c40_45 = arith.constant 40 : index
    %c0_46 = arith.constant 0 : index
    %58 = vector.load %arg11[%c40_45, %c0_46] : memref<72x384xbf16, #tpu.memory_space<vmem>>, vector<8x384xbf16>
    tpu.vector_store %arg11[%c40_45, %c0_46], %57 {strides = array<i32>} : memref<72x384xbf16, #tpu.memory_space<vmem>>, vector<8x384xbf16>,
    %59 = vector.extract_strided_slice %46 {offsets = [0, 145], sizes = [8, 384], strides = [1, 1]} : vector<8x640xbf16> to vector<8x384xbf16>
    %c48_47 = arith.constant 48 : index
    %c0_48 = arith.constant 0 : index
    %60 = vector.load %arg11[%c48_47, %c0_48] : memref<72x384xbf16, #tpu.memory_space<vmem>>, vector<8x384xbf16>
    tpu.vector_store %arg11[%c48_47, %c0_48], %59 {strides = array<i32>} : memref<72x384xbf16, #tpu.memory_space<vmem>>, vector<8x384xbf16>,
    %61 = vector.extract_strided_slice %46 {offsets = [0, 146], sizes = [8, 384], strides = [1, 1]} : vector<8x640xbf16> to vector<8x384xbf16>
    %c56_49 = arith.constant 56 : index
    %c0_50 = arith.constant 0 : index
    %62 = vector.load %arg11[%c56_49, %c0_50] : memref<72x384xbf16, #tpu.memory_space<vmem>>, vector<8x384xbf16>
    tpu.vector_store %arg11[%c56_49, %c0_50], %61 {strides = array<i32>} : memref<72x384xbf16, #tpu.memory_space<vmem>>, vector<8x384xbf16>,
    %63 = vector.extract_strided_slice %46 {offsets = [0, 147], sizes = [8, 384], strides = [1, 1]} : vector<8x640xbf16> to vector<8x384xbf16>
    %c64_51 = arith.constant 64 : index
    %c0_52 = arith.constant 0 : index
    %64 = vector.load %arg11[%c64_51, %c0_52] : memref<72x384xbf16, #tpu.memory_space<vmem>>, vector<8x384xbf16>
    tpu.vector_store %arg11[%c64_51, %c0_52], %63 {strides = array<i32>} : memref<72x384xbf16, #tpu.memory_space<vmem>>, vector<8x384xbf16>,
    %c0_53 = arith.constant 0 : index
    %c0_54 = arith.constant 0 : index
    %65 = vector.load %arg6[%c0_53, %c0_54] : memref<8x72xbf16, #tpu.memory_space<vmem>>, vector<8x72xbf16>
    %c0_55 = arith.constant 0 : index
    %c0_56 = arith.constant 0 : index
    %66 = vector.load %arg11[%c0_55, %c0_56] : memref<72x384xbf16, #tpu.memory_space<vmem>>, vector<72x384xbf16>
    %cst_57 = arith.constant dense<0.000000e+00> : vector<8x384xf32>
    %67 = tpu.matmul %65, %66, %cst_57 {dimension_numbers = #tpu.dot_dimension_numbers<[1], [0], [0], [1], [0, 0, 1, 1], [], []>} : vector<8x72xbf16>, vector<72x384xbf16>, vector<8x384xf32> -> vector<8x384xf32>
    %c0_58 = arith.constant 0 : index
    %c0_59 = arith.constant 0 : index
    %68 = vector.load %arg7[%c0_58, %c0_59] : memref<8x1xf32, #tpu.memory_space<vmem>>, vector<8x1xf32>
    %69 = vector.broadcast %68 : vector<8x1xf32> to vector<8x384xf32>
    %70 = arith.addf %67, %69 : vector<8x384xf32>
    %cst_60 = arith.constant 0.000000e+00 : f32
    %71 = vector.broadcast %cst_60 : f32 to vector<8x384xf32>
    %72 = arith.maximumf %70, %71 : vector<8x384xf32>
    %73 = arith.addf %72, %27 : vector<8x384xf32>
    %74 = arith.addf %73, %36 : vector<8x384xf32>
    %c0_61 = arith.constant 0 : index
    %c0_62 = arith.constant 0 : index
    %75 = vector.load %arg9[%c0_61, %c0_62] : memref<8x384xf32, #tpu.memory_space<vmem>>, vector<8x384xf32>
    tpu.vector_store %arg9[%c0_61, %c0_62], %74 {strides = array<i32>} : memref<8x384xf32, #tpu.memory_space<vmem>>, vector<8x384xf32>,
    return
  }
  func.func @transform_0(%arg0: i32) -> (i32, i32, i32) {
    %c0_i32 = arith.constant 0 : i32
    %c0_i32_0 = arith.constant 0 : i32
    %c0_i32_1 = arith.constant 0 : i32
    return %arg0, %c0_i32, %c0_i32_0 : i32, i32, i32
  }
  func.func @transform_1(%arg0: i32) -> (i32, i32) {
    %c0_i32 = arith.constant 0 : i32
    %c0_i32_0 = arith.constant 0 : i32
    %c0_i32_1 = arith.constant 0 : i32
    return %c0_i32, %c0_i32_0 : i32, i32
  }
  func.func @transform_2(%arg0: i32) -> (i32, i32) {
    %c0_i32 = arith.constant 0 : i32
    %c0_i32_0 = arith.constant 0 : i32
    %c0_i32_1 = arith.constant 0 : i32
    return %c0_i32, %c0_i32_0 : i32, i32
  }
  func.func @transform_3(%arg0: i32) -> (i32, i32) {
    %c0_i32 = arith.constant 0 : i32
    %c0_i32_0 = arith.constant 0 : i32
    %c0_i32_1 = arith.constant 0 : i32
    return %c0_i32, %c0_i32_0 : i32, i32
  }
  func.func @transform_4(%arg0: i32) -> (i32, i32) {
    %c0_i32 = arith.constant 0 : i32
    %c0_i32_0 = arith.constant 0 : i32
    %c0_i32_1 = arith.constant 0 : i32
    return %c0_i32, %c0_i32_0 : i32, i32
  }
  func.func @transform_5(%arg0: i32) -> (i32, i32) {
    %c0_i32 = arith.constant 0 : i32
    %c0_i32_0 = arith.constant 0 : i32
    %c0_i32_1 = arith.constant 0 : i32
    return %c0_i32, %c0_i32_0 : i32, i32
  }
  func.func @transform_6(%arg0: i32) -> (i32, i32) {
    %c0_i32 = arith.constant 0 : i32
    %c0_i32_0 = arith.constant 0 : i32
    %c0_i32_1 = arith.constant 0 : i32
    return %c0_i32, %c0_i32_0 : i32, i32
  }
  func.func @transform_7(%arg0: i32) -> (i32, i32) {
    %c0_i32 = arith.constant 0 : i32
    %c0_i32_0 = arith.constant 0 : i32
    return %c0_i32, %arg0 : i32, i32
  }
  func.func @transform_8(%arg0: i32) -> (i32, i32) {
    %c0_i32 = arith.constant 0 : i32
    %c0_i32_0 = arith.constant 0 : i32
    return %c0_i32, %arg0 : i32, i32
  }
}

</mosaic_0001>

<bundles_post_ra>
// kernel: up_forward.1
= control target key start
LH: loop header
LB: loop body
LE: loop exit
PB: predicated region body
PF: predicated region fallthrough
CT: control target
= control target key end

     0   :  { %s1391_s27 = smov 0   ;;  %s1614_s0 = inlined_call_operand.vmem [shape: bf16[2,8,640], index: 0, kind: input, shape index: {}]   ;;  %s1615_s1 = inlined_call_operand.vmem [shape: bf16[8,72], index: 1, kind: input, shape index: {}]   ;;  %s1616_s2 = inlined_call_operand.vmem [shape: f32[8,1], index: 2, kind: input, shape index: {}]   ;;  %s1617_s3 = inlined_call_operand.vmem [shape: bf16[8,8], index: 3, kind: input, shape index: {}]   ;;  %s1618_s4 = inlined_call_operand.vmem [shape: f32[8,1], index: 4, kind: input, shape index: {}]   ;;  %s1619_s5 = inlined_call_operand.vmem [shape: bf16[8,72], index: 5, kind: input, shape index: {}]   ;;  %s1620_s6 = inlined_call_operand.vmem [shape: f32[8,1], index: 6, kind: input, shape index: {}]   ;;  %s1621_s7 = inlined_call_operand.vmem [shape: f32[1,768], index: 7, kind: input, shape index: {}]   ;;  %s1622_s8 = inlined_call_operand.vmem [shape: f32[8,768], index: 8, kind: output, shape index: {}]  }
   0x1 LB: > { %s1397_s28 = sadd.s32 4294967295, %s1333_s27   ;;  %p1199_p0 = scmp.ge.s32.totalorder %s1333_s27, 1  ;;  %s1333_s27 = sphi %s1391_s27, %s18_s27  }
   0x2   : > { %p272_p1 = scmp.lt.s32.totalorder %s1333_s27, 3 }
   0x4   : > { %p273_p2 = pnand %p1199_p0, %p272_p1 }
   0x5   : > { %p310_p3 = scmp.lt.s32.totalorder (!%p273_p2), %s1397_s28, 1  ;;  %s1335_s12 = smov (!%p273_p2), 18   ;;  %v1337_v4 = vmov (!%p273_p2), 0.0   ;;  %vm338_vm0 = vcmask (!%p273_p2), 1043456   ;;  %v1344_v7 = vmov (!%p273_p2), 0   ;;  %vm1345_vm1 = vmmov (!%p273_p2), 0  }
   0x6   : > { %276 = sbr.rel (%p273_p2) target bundleno = 1019 (0x3fb), region = 52  ;;  %s1336_s13 = smov (!%p273_p2), 19   ;;  %1261 = vmatprep.subr.bf16.mxu1 (!%p273_p2), %v1337_v4  ;;  %766 = vst [vmem:[#allocation4] sm:$0xf] (!%p273_p2), %v1344_v7  ;;  %767 = vst [vmem:[#allocation4 + $0x10] sm:$0xf] (!%p273_p2), %v1344_v7  ;;  %604 = vmatprep.mubr.bf16.mxu0 (!%p273_p2), %v1344_v7 }
   0x7   : > { %s1338_s14 = smov (!%p273_p2), 17   ;;  %s1339_s15 = smov (!%p273_p2), 1   ;;  %1315 = vset.pattern.permute.xlu0 (!%p273_p2), %v1344_v7  ;;  %1316 = vset.pattern.permute.xlu1 (!%p273_p2), %v1344_v7  ;;  %v480_v8 = vld [vmem:[%s1616_s2] sm:$0xff] (!%p273_p2)  ;;  %vm354_vm2 = vcmask (!%p273_p2), 146432   ;;  %vm340_vm3 = vcmask (!%p273_p2), 154624   ;;  %vm368_vm4 = vcmask (!%p273_p2), 138240  }
   0x8   : > { %s1340_s16 = smov (!%p273_p2), 127   ;;  %s1341_s17 = smov (!%p273_p2), 111   ;;  %1271 = vmatprep.mubr.msk.bf16.mxu1 (!%p273_p2), %vm1345_vm1, %v1337_v4  ;;  %vm382_vm5 = vcmask (!%p273_p2), 7168   ;;  %vm406_vm6 = vcmask (!%p273_p2), 1039360   ;;  %vm422_vm7 = vcmask (!%p273_p2), 908288   ;;  %vm438_vm8 = vcmask (!%p273_p2), 900096  }
   0x9   : > { %s1342_s18 = smov (!%p273_p2), 110   ;;  %s1343_s19 = smov (!%p273_p2), 109   ;;  %vm454_vm9 = vcmask (!%p273_p2), 891904   ;;  %vm558_vm10 = vcmask (!%p273_p2), 588800   ;;  %vm666_vm11 = vcmask (!%p273_p2), 64512  }
   0xd   : > { %s311_s29 = scalar_select %p310_p3, %s1397_s28, 1 }
   0xf   : > { %s1295_s30 = smul.u32 20, %s311_s29 }
  0x11   : > { %s1406_s11 = scalar_lea.vmem %s1614_s0, %s1295_s30  ;;  %s315_s30 = smul.u32 3, %s1397_s28 }
  0x12   : > { %v327_v0 = vld [vmem:[%s1406_s11] sm:$0xff]  ;;  %v328_v1 = vld [vmem:[%s1406_s11 + $0x8] sm:$0xff]  ;;  %v329_v6 = vld [vmem:[%s1406_s11 + $0x10] sm:$0xf] }
  0x13   : > { %347 = vrot.lane.b32.xlu1 %v327_v0, %s1335_s12  ;;  %332 = vrot.lane.b32.xlu0 %v327_v0, %s1336_s13  ;;  %v390_v2 = vrot.slane %v328_v1, 4  ;;  %v389_v3 = vrot.slane %v327_v0, 4  ;;  %p316_p4 = scmp.lt.s32.totalorder %s315_s30, 5 }
  0x15   : > { %395 = vst [vmem:[#allocation2 + $0x38] sm:$0xf] %v390_v2  ;;  %v1416_v5 = vsel %vm338_vm0, %v389_v3, %v390_v2  ;;  %s1624_s30 = smov (!%p316_p4, %s315_s30), 5 }
  0x16   : > { %s318_s11 = scalar_lea.vmem %s1621_s7, %s1624_s30 }
  0x17   : > { %349 = vrot.lane.b32.xlu1 %v328_v1, %s1335_s12  ;;  %334 = vrot.lane.b32.xlu0 %v328_v1, %s1336_s13 }
  0x1b   : > { %363 = vrot.lane.b32.xlu1 %v328_v1, %s1338_s14  ;;  %361 = vrot.lane.b32.xlu0 %v327_v0, %s1338_s14 }
  0x1f   : > { %377 = vrot.lane.b32.xlu1 %v328_v1, %s1339_s15  ;;  %375 = vrot.lane.b32.xlu0 %v327_v0, %s1339_s15 }
  0x23   : > { %399 = vrot.lane.b32.xlu1 %v328_v1, %s1340_s16  ;;  %397 = vrot.lane.b32.xlu0 %v327_v0, %s1340_s16 }
  0x27   : > { %415 = vrot.lane.b32.xlu1 %v328_v1, %s1341_s17  ;;  %413 = vrot.lane.b32.xlu0 %v327_v0, %s1341_s17 }
  0x2b   : > { %431 = vrot.lane.b32.xlu1 %v328_v1, %s1342_s18  ;;  %429 = vrot.lane.b32.xlu0 %v327_v0, %s1342_s18 }
  0x2f   : > { %445 = vrot.lane.b32.xlu1 %v327_v0, %s1343_s19  ;;  %401 = vrot.lane.b32.xlu0 %v329_v6, %s1340_s16 }
  0x33   : > { %417 = vrot.lane.b32.xlu1 %v329_v6, %s1341_s17  ;;  %447 = vrot.lane.b32.xlu0 %v328_v1, %s1343_s19 }
  0x37   : > { %449 = vrot.lane.b32.xlu1 %v329_v6, %s1343_s19  ;;  %433 = vrot.lane.b32.xlu0 %v329_v6, %s1342_s18 }
  0x3b   : > { %483 = vperm.xlu0 %1315, %v480_v8  }
  0x85   : > { %v348_v9 = vpop.permute.xlu1 %347  ;;  %v333_v10 = vpop.permute.xlu0 %332 }
  0x86   : > { %v351_v11 = vrot.slane %v348_v9, 4  ;;  %v336_v14 = vrot.slane %v333_v10, 4 }
  0x89   : > { %v350_v12 = vpop.permute.xlu1 %349  ;;  %v335_v13 = vpop.permute.xlu0 %334 }
  0x8a   : > { %v352_v15 = vrot.slane %v350_v12, 4  ;;  %v337_v16 = vrot.slane %v335_v13, 4 }
  0x8c   : > { %v353_v17 = vsel %vm338_vm0, %v351_v11, %v352_v15  ;;  %v356_v18 = vsel %vm354_vm2, %v350_v12, %v352_v15  ;;  %v339_v19 = vsel %vm338_vm0, %v336_v14, %v337_v16  ;;  %v342_v20 = vsel %vm340_vm3, %v335_v13, %v337_v16 }
  0x8d   : > { %v355_v21 = vsel %vm354_vm2, %v348_v9, %v353_v17  ;;  %360 = vst [vmem:[#allocation2 + $0x14] sm:$0xf] %v356_v18  ;;  %v341_v22 = vsel %vm340_vm3, %v333_v10, %v339_v19  ;;  %346 = vst [vmem:[#allocation2 + $0x8] sm:$0xf] %v342_v20  ;;  %v364_v23 = vpop.permute.xlu1 %363  ;;  %v362_v24 = vpop.permute.xlu0 %361 }
  0x8e   : > { %v366_v25 = vrot.slane %v364_v23, 4  ;;  %v365_v26 = vrot.slane %v362_v24, 4  ;;  %v1203_v27 = vcombine.high %v341_v22, %v355_v21  ;;  %v1202_v28 = vcombine.low %v341_v22, %v355_v21  ;;  %v461_v21 = vld [vmem:[%s1615_s1] sm:$0xf] }
  0x90   : > { %v370_v29 = vsel %vm368_vm4, %v364_v23, %v366_v25  ;;  %v367_v30 = vsel %vm338_vm0, %v365_v26, %v366_v25  ;;  %572 = vmatprep.subr.bf16.mxu0 %v1203_v27  ;;  %v660_v25 = vld [vmem:[%s1618_s4] sm:$0xff] }
  0x91   : > { %374 = vst [vmem:[#allocation2 + $0x20] sm:$0xf] %v370_v29  ;;  %v369_v31 = vsel %vm368_vm4, %v362_v24, %v367_v30  ;;  %v378_v32 = vpop.permute.xlu1 %377  ;;  %v376_v33 = vpop.permute.xlu0 %375  ;;  %573 = vmatpush1.bf16.msra.mxu0 %v1202_v28  ;;  %663 = vperm.xlu1 %1316, %v660_v25  }
  0x92   : > { %v380_v34 = vrot.slane %v378_v32, 4  ;;  %v379_v35 = vrot.slane %v376_v33, 4 }
  0x94   : > { %v384_v36 = vsel %vm382_vm5, %v378_v32, %v380_v34  ;;  %v381_v37 = vsel %vm338_vm0, %v379_v35, %v380_v34  ;;  %v1317_v38 = vld [vmem:[#allocation2 + $0x8] ss:$12 sps:$4 sm:$0xff]  }
  0x95   : > { %388 = vst [vmem:[#allocation2 + $0x2c] sm:$0xf] %v384_v36  ;;  %v383_v39 = vsel %vm382_vm5, %v376_v33, %v381_v37  ;;  %v400_v40 = vpop.permute.xlu1 %399  ;;  %v398_v41 = vpop.permute.xlu0 %397  ;;  %1262 = vmatpush3.bf16.msra.mxu1 %v1317_v38  ;;  %v656_v38 = vld [vmem:[%s1617_s3] sm:$0xf] }
  0x96   : > { %v404_v42 = vrot.slane %v400_v40, 4  ;;  %v403_v43 = vrot.slane %v398_v41, 4  ;;  %v1206_v44 = vcombine.high %v369_v31, %v383_v39  ;;  %v1205_v45 = vcombine.low %v369_v31, %v383_v39  ;;  %1263 = vmatprep.subr.bf16.mxu1 %v1337_v4 }
  0x98   : > { %v405_v46 = vsel %vm338_vm0, %v403_v43, %v404_v42  ;;  %574 = vmatprep.subr.bf16.mxu0 %v1206_v44 }
  0x99   : > { %v416_v47 = vpop.permute.xlu1 %415  ;;  %v414_v48 = vpop.permute.xlu0 %413  ;;  %575 = vmatpush1.bf16.msra.mxu0 %v1205_v45  ;;  %v407_v49 = vsel %vm406_vm6, %v405_v46, %v400_v40 }
  0x9a   : > { %v420_v50 = vrot.slane %v416_v47, 4  ;;  %v419_v51 = vrot.slane %v414_v48, 4  ;;  %v1209_v52 = vcombine.high %v1416_v5, %v407_v49  ;;  %v1208_v53 = vcombine.low %v1416_v5, %v407_v49 }
  0x9c   : > { %v421_v54 = vsel %vm338_vm0, %v419_v51, %v420_v50  ;;  %v1318_v55 = vld [vmem:[#allocation2 + $0x20] ss:$12 sps:$4 sm:$0xff]   ;;  %576 = vmatprep.subr.bf16.mxu0 %v1209_v52 }
  0x9d   : > { %v432_v56 = vpop.permute.xlu1 %431  ;;  %v430_v57 = vpop.permute.xlu0 %429  ;;  %v423_v58 = vsel %vm422_vm7, %v421_v54, %v416_v47  ;;  %577 = vmatpush1.bf16.msra.mxu0 %v1208_v53  ;;  %1264 = vmatpush3.bf16.msra.mxu1 %v1318_v55  ;;  %v1512_v47 = vld [vmem:[#allocation4 + $0x10] sm:$0xf]  ;;  %v768_v52 = vld [vmem:[%s318_s11] sm:$0x7] }
  0x9e   : > { %v436_v59 = vrot.slane %v432_v56, 4  ;;  %v435_v60 = vrot.slane %v430_v57, 4  ;;  %1265 = vmatprep.subr.bf16.mxu1 %v1337_v4  ;;  %872 = vrot.lane.b32.xlu1 %v1512_v47, %s1340_s16 }
  0x9f   : > { %887 = vrot.lane.b32.xlu0 %v1512_v47, %s1341_s17 }
  0xa0   : > { %v437_v61 = vsel %vm338_vm0, %v435_v60, %v436_v59 }
  0xa1   : > { %v446_v62 = vpop.permute.xlu1 %445  ;;  %v402_v63 = vpop.permute.xlu0 %401  ;;  %v439_v0 = vsel %vm438_vm8, %v437_v61, %v432_v56 }
  0xa2   : > { %v408_v1 = vsel %vm406_vm6, %v404_v42, %v402_v63  ;;  %v1212_v2 = vcombine.high %v423_v58, %v439_v0  ;;  %v1211_v3 = vcombine.low %v423_v58, %v439_v0  ;;  %v451_v5 = vrot.slane %v446_v62, 4 }
  0xa3   : > { %412 = vst [vmem:[#allocation2 + $0x44] sm:$0xf] %v408_v1 }
  0xa4   : > { %578 = vmatprep.subr.bf16.mxu0 %v1212_v2 }
  0xa5   : > { %v418_v6 = vpop.permute.xlu1 %417  ;;  %v448_v8 = vpop.permute.xlu0 %447  ;;  %579 = vmatpush1.bf16.msra.mxu0 %v1211_v3 }
  0xa6   : > { %v424_v9 = vsel %vm422_vm7, %v420_v50, %v418_v6  ;;  %v452_v10 = vrot.slane %v448_v8, 4 }
  0xa7   : > { %428 = vst [vmem:[#allocation2 + $0x50] sm:$0xf] %v424_v9 }
  0xa8   : > { %v453_v11 = vsel %vm338_vm0, %v451_v5, %v452_v10 }
  0xa9   : > { %v455_v12 = vsel %vm454_vm9, %v453_v11, %v448_v8  ;;  %v450_v13 = vpop.permute.xlu1 %449  ;;  %v434_v14 = vpop.permute.xlu0 %433 }
  0xaa   : > { %v456_v15 = vsel %vm454_vm9, %v452_v10, %v450_v13  ;;  %v440_v16 = vsel %vm438_vm8, %v436_v59, %v434_v14  ;;  %v1319_v17 = vld [vmem:[#allocation2 + $0x38] ss:$12 sps:$4 sm:$0xff]   ;;  %v1215_v18 = vcombine.high %v455_v12, %v455_v12  ;;  %v1214_v19 = vcombine.low %v455_v12, %v455_v12 }
  0xab   : > { %460 = vst [vmem:[#allocation2 + $0x68] sm:$0xf] %v456_v15  ;;  %444 = vst [vmem:[#allocation2 + $0x5c] sm:$0xf] %v440_v16  ;;  %1266 = vmatpush3.bf16.msra.mxu1 %v1319_v17 }
  0xac   : > { %1217 = vmatprep.subr.msk.bf16.mxu0 %vm338_vm0, %v1215_v18  ;;  %v564_v20 = vsel %vm338_vm0, %v1214_v19, 0  ;;  %1267 = vmatprep.subr.bf16.mxu1 %v1337_v4 }
  0xad   : > { %581 = vmatpush1.bf16.msra.mxu0 %v564_v20 }
  0xb0   : > { %1218 = vmatmul.mubr.msk.bf16.vlgmr.msra.gmra.mrb[0].mxu0 %vm558_vm10, %v461_v21 }
  0xb1   : > { %711 = vmatprep.mubr.bf16.mxu0 %v1344_v7 }
  0xb2   : > { %v1320_v22 = vld [vmem:[#allocation2 + $0x50] ss:$12 sps:$4 sm:$0xff]   ;;  %v1321_v23 = vld [vmem:[#allocation2 + $0x68] ss:$0 sps:$4 sm:$0xff]  }
  0xb3   : > { %1268 = vmatpush3.bf16.msra.mxu1 %v1320_v22  ;;  %v570_v24 = vsel %vm338_vm0, %v1321_v23, 0  ;;  %v947_v22 = vld [vmem:[%s1620_s6] sm:$0xff] }
  0xb4   : > { %1269 = vmatprep.subr.bf16.mxu1 %v1337_v4 }
  0xb7   : > { %1270 = vmatpush3.bf16.msra.mxu1 %v570_v24 }
  0xb8   : > { %1275 = vmatprep.subr.bf16.mxu1 %v1337_v4 }
  0xba   : > { %1272 = vmatmul.mubr.msk.bf16.vlgmr.msra.gmra.mrb[0].mxu1 %vm558_vm10, %v461_v21  ;;  %v484_v26 = vpop.permute.xlu0 %483 }
  0xbb   : > { %1277 = vmatprep.mubr.msk.bf16.mxu1 %vm1345_vm1, %v1337_v4 }
 0x110   : > { %v664_v49 = vpop.permute.xlu1 %663 }
 0x111   : > { %v888_v25 = vpop.permute.xlu0 %887 }
 0x114   : > { %v873_v23 = vpop.permute.xlu1 %872 }
 0x183   : > { %v606_v27 = vpop.f32.mrb[0].mxu0 }
 0x184   : > { %v607_v28 = vadd.f32 %v606_v27, %v484_v26  ;;  %v608_v29 = vpop.f32.mrb[1].mxu0 }
 0x185   : > { %v609_v30 = vadd.f32 %v608_v29, %v484_v26  ;;  %v610_v31 = vpop.f32.mrb[2].mxu0 }
 0x186   : > { %v1490_v32 = vmax.f32 %v607_v28, 0.0  ;;  %v611_v33 = vpop.f32.mrb[3].mxu0 }
 0x187   : > { %v1492_v34 = vmax.f32 %v609_v30, 0.0 }
 0x188   : > { %v657_v35 = vpack.c.bf16 %v1490_v32, %v1490_v32 }
 0x189   : > { %v658_v36 = vpack.c.bf16 %v1492_v34, %v1492_v34 }
 0x18a   : > { %v671_v37 = vsel %vm338_vm0, %v657_v35, 0 }
 0x18b   : > { %1220 = vmatprep.subr.msk.bf16.mxu0 %vm338_vm0, %v658_v36 }
 0x18c   : > { %680 = vmatpush1.bf16.msra.mxu0 %v671_v37 }
 0x18d   : > { %v647_v39 = vpop.f32.mrb[0].mxu1 }
 0x18e   : > { %v648_v40 = vadd.f32 %v647_v39, %v484_v26  ;;  %v1273_v41 = vpop.f32.mrb[1].mxu1 }
 0x18f   : > { %1221 = vmatmul.mubr.msk.bf16.vlgmr.msra.gmra.mrb[4].mxu0 %vm666_vm11, %v656_v38  ;;  %v650_v42 = vpop.f32.mrb[2].mxu1 }
 0x190   : > { %1069 = vmatprep.mubr.bf16.mxu0 %v1344_v7  ;;  %v1504_v43 = vmax.f32 %v648_v40, 0.0  ;;  %v1274_v44 = vpop.f32.mrb[3].mxu1  ;;  %v770_v7 = vlaneseq }
 0x192   : > { %v659_v45 = vpack.c.bf16 %v1504_v43, %v1504_v43  ;;  %v771_v48 = vshrl.u32 %v770_v7, 7 }
 0x194   : > { %v677_v46 = vsel %vm338_vm0, %v659_v45, 0  ;;  %v772_v50 = vsub.s32 0, %v771_v48  ;;  %v776_v53 = vsub.s32 1, %v771_v48  ;;  %v780_v3 = vsub.s32 2, %v771_v48 }
 0x195   : > { %1276 = vmatpush3.bf16.msra.mxu1 %v677_v46 }
 0x196   : > { %1281 = vmatprep.subr.bf16.mxu1 %v1337_v4  ;;  %v773_v59 = vrot.slane %v768_v52, %v772_v50  ;;  %v777_v62 = vrot.slane %v768_v52, %v776_v53  ;;  %v781_v12 = vrot.slane %v768_v52, %v780_v3 }
 0x198   : > { %1278 = vmatmul.mubr.msk.bf16.vlgmr.msra.gmra.mrb[4].mxu1 %vm666_vm11, %v656_v38 }
 0x199   : > { %1291 = vmatprep.mubr.msk.bf16.mxu1 %vm1345_vm1, %v1337_v4 }
 0x262   : > { %v713_v51 = vpop.f32.mrb[4].mxu0 }
 0x263   : > { %v714_v54 = vadd.f32 %v713_v51, %v664_v49  ;;  %v715_v55 = vpop.f32.mrb[5].mxu0 }
 0x264   : > { %v716_v56 = vadd.f32 %v715_v55, %v664_v49  ;;  %v717_v57 = vpop.f32.mrb[6].mxu0 }
 0x265   : > { %v760_v58 = vmax.f32 %v714_v54, 0.0  ;;  %v718_v60 = vpop.f32.mrb[7].mxu0 }
 0x266   : > { %v761_v61 = vmax.f32 %v716_v56, 0.0 }
 0x267   : > { %v1526_v63 = vadd.f32 %v760_v58, %v1490_v32 }
 0x268   : > { %v1529_v0 = vadd.f32 %v761_v61, %v1492_v34 }
 0x269   : > { %v785_v1 = vmul.f32 %v773_v59, %v1526_v63 }
 0x26a   : > { %v786_v2 = vmul.f32 %v777_v62, %v1529_v0 }
 0x26b   : > { %v754_v6 = vpop.f32.mrb[4].mxu1 }
 0x26c   : > { %v1245_v5 = vpack.c.bf16 %v786_v2, %v785_v1  ;;  %v755_v8 = vadd.f32 %v754_v6, %v664_v49  ;;  %v1279_v9 = vpop.f32.mrb[5].mxu1 }
 0x26d   : > { %v757_v10 = vpop.f32.mrb[6].mxu1 }
 0x26e   : > { %801 = vst [vmem:[#allocation4 + $0x4] sm:$0xff] %v1245_v5  ;;  %v762_v11 = vmax.f32 %v755_v8, 0.0  ;;  %v1280_v13 = vpop.f32.mrb[7].mxu1 }
 0x270   : > { %v1534_v14 = vadd.f32 %v762_v11, %v1504_v43 }
 0x272   : > { %v787_v15 = vmul.f32 %v781_v12, %v1534_v14 }
 0x274   : > { %v1246_v16 = vpack.c.bf16 %v787_v15, %v787_v15 }
 0x275   : > { %v803_v17 = vld [vmem:[#allocation4] sm:$0xff] }
 0x276   : > { %808 = vrot.lane.b32.xlu1 %v803_v17, %s1336_s13  ;;  %802 = vst [vmem:[#allocation4 + $0xc] sm:$0xf] %v1246_v16  ;;  %v860_v19 = vrot.slane %v803_v17, 4 }
 0x27a   : > { %821 = vrot.lane.b32.xlu1 %v803_v17, %s1335_s12 }
 0x27d   : > { %v804_v18 = vld [vmem:[#allocation4 + $0x8] sm:$0xff] }
 0x27e   : > { %834 = vrot.lane.b32.xlu1 %v803_v17, %s1338_s14  ;;  %810 = vrot.lane.b32.xlu0 %v804_v18, %s1336_s13  ;;  %v861_v20 = vrot.slane %v804_v18, 4 }
 0x280   : > { %866 = vst [vmem:[#allocation3 + $0x38] sm:$0xf] %v861_v20  ;;  %v1542_v21 = vsel %vm338_vm0, %v860_v19, %v861_v20 }
 0x282   : > { %847 = vrot.lane.b32.xlu1 %v803_v17, %s1339_s15  ;;  %823 = vrot.lane.b32.xlu0 %v804_v18, %s1335_s12 }
 0x286   : > { %868 = vrot.lane.b32.xlu1 %v803_v17, %s1340_s16  ;;  %836 = vrot.lane.b32.xlu0 %v804_v18, %s1338_s14 }
 0x28a   : > { %883 = vrot.lane.b32.xlu1 %v803_v17, %s1341_s17  ;;  %849 = vrot.lane.b32.xlu0 %v804_v18, %s1339_s15  ;;  %s1201_s15 = sshll.u32 %s1624_s30, 3 }
 0x28e   : > { %898 = vrot.lane.b32.xlu1 %v803_v17, %s1342_s18  ;;  %870 = vrot.lane.b32.xlu0 %v804_v18, %s1340_s16 }
 0x292   : > { %915 = vrot.lane.b32.xlu1 %v804_v18, %s1343_s19  ;;  %885 = vrot.lane.b32.xlu0 %v804_v18, %s1341_s17 }
 0x296   : > { %902 = vrot.lane.b32.xlu1 %v1512_v47, %s1342_s18  ;;  %900 = vrot.lane.b32.xlu0 %v804_v18, %s1342_s18  ;;  %s324_s18 = scalar_lea.vmem %s1622_s8, %s1201_s15 }
 0x29a   : > { %950 = vperm.xlu1 %1316, %v947_v22   ;;  %913 = vrot.lane.b32.xlu0 %v803_v17, %s1343_s19 }
 0x29e   : > { %917 = vrot.lane.b32.xlu0 %v1512_v47, %s1343_s19 }
 0x2e8   : > { %v809_v24 = vpop.permute.xlu1 %808 }
 0x2e9   : > { %v812_v29 = vrot.slane %v809_v24, 4 }
 0x2ec   : > { %v822_v26 = vpop.permute.xlu1 %821 }
 0x2ed   : > { %v825_v38 = vrot.slane %v822_v26, 4 }
 0x2f0   : > { %v835_v27 = vpop.permute.xlu1 %834  ;;  %v811_v28 = vpop.permute.xlu0 %810 }
 0x2f1   : > { %v813_v30 = vrot.slane %v811_v28, 4  ;;  %v838_v46 = vrot.slane %v835_v27, 4 }
 0x2f3   : > { %v814_v31 = vsel %vm338_vm0, %v812_v29, %v813_v30  ;;  %v816_v33 = vsel %vm340_vm3, %v811_v28, %v813_v30 }
 0x2f4   : > { %v848_v35 = vpop.permute.xlu1 %847  ;;  %v815_v36 = vsel %vm340_vm3, %v809_v24, %v814_v31  ;;  %820 = vst [vmem:[#allocation3 + $0x8] sm:$0xf] %v816_v33  ;;  %v824_v37 = vpop.permute.xlu0 %823 }
 0x2f5   : > { %v826_v39 = vrot.slane %v824_v37, 4  ;;  %v851_v54 = vrot.slane %v848_v35, 4 }
 0x2f7   : > { %v827_v40 = vsel %vm338_vm0, %v825_v38, %v826_v39  ;;  %v829_v41 = vsel %vm354_vm2, %v824_v37, %v826_v39 }
 0x2f8   : > { %v869_v42 = vpop.permute.xlu1 %868  ;;  %v828_v44 = vsel %vm354_vm2, %v822_v26, %v827_v40  ;;  %833 = vst [vmem:[#allocation3 + $0x14] sm:$0xf] %v829_v41  ;;  %v837_v45 = vpop.permute.xlu0 %836 }
 0x2f9   : > { %v839_v47 = vrot.slane %v837_v45, 4  ;;  %v1225_v7 = vcombine.low %v815_v36, %v828_v44  ;;  %v1226_v48 = vcombine.high %v815_v36, %v828_v44  ;;  %v874_v62 = vrot.slane %v869_v42, 4  ;;  %v928_v44 = vld [vmem:[%s1619_s5] sm:$0xf] }
 0x2fb   : > { %v840_v49 = vsel %vm338_vm0, %v838_v46, %v839_v47  ;;  %v842_v50 = vsel %vm368_vm4, %v837_v45, %v839_v47  ;;  %1037 = vmatprep.subr.bf16.mxu0 %v1226_v48 }
 0x2fc   : > { %v884_v51 = vpop.permute.xlu1 %883  ;;  %v841_v52 = vsel %vm368_vm4, %v835_v27, %v840_v49  ;;  %846 = vst [vmem:[#allocation3 + $0x20] sm:$0xf] %v842_v50  ;;  %v850_v53 = vpop.permute.xlu0 %849  ;;  %1038 = vmatpush1.bf16.msra.mxu0 %v1225_v7 }
 0x2fd   : > { %v852_v55 = vrot.slane %v850_v53, 4  ;;  %v889_v11 = vrot.slane %v884_v51, 4 }
 0x2ff   : > { %v853_v56 = vsel %vm338_vm0, %v851_v54, %v852_v55  ;;  %v855_v57 = vsel %vm382_vm5, %v850_v53, %v852_v55  ;;  %v1322_v58 = vld [vmem:[#allocation3 + $0x8] ss:$12 sps:$4 sm:$0xff]  }
 0x300   : > { %v899_v59 = vpop.permute.xlu1 %898  ;;  %v854_v60 = vsel %vm382_vm5, %v848_v35, %v853_v56  ;;  %859 = vst [vmem:[#allocation3 + $0x2c] sm:$0xf] %v855_v57  ;;  %v871_v61 = vpop.permute.xlu0 %870  ;;  %1282 = vmatpush3.bf16.msra.mxu1 %v1322_v58 }
 0x301   : > { %v875_v1 = vrot.slane %v871_v61, 4  ;;  %v1228_v2 = vcombine.low %v841_v52, %v854_v60  ;;  %v1229_v3 = vcombine.high %v841_v52, %v854_v60  ;;  %1283 = vmatprep.subr.bf16.mxu1 %v1337_v4 }
 0x303   : > { %v876_v5 = vsel %vm338_vm0, %v874_v62, %v875_v1  ;;  %v878_v6 = vsel %vm406_vm6, %v875_v1, %v873_v23  ;;  %1039 = vmatprep.subr.bf16.mxu0 %v1229_v3  ;;  %v904_v23 = vrot.slane %v899_v59, 4 }
 0x304   : > { %v877_v8 = vsel %vm406_vm6, %v876_v5, %v871_v61  ;;  %882 = vst [vmem:[#allocation3 + $0x44] sm:$0xf] %v878_v6  ;;  %v886_v9 = vpop.permute.xlu0 %885  ;;  %v916_v10 = vpop.permute.xlu1 %915  ;;  %1040 = vmatpush1.bf16.msra.mxu0 %v1228_v2 }
 0x305   : > { %v890_v12 = vrot.slane %v886_v9, 4  ;;  %v1231_v13 = vcombine.low %v1542_v21, %v877_v8  ;;  %v1232_v15 = vcombine.high %v1542_v21, %v877_v8  ;;  %v920_v29 = vrot.slane %v916_v10, 4 }
 0x307   : > { %v891_v16 = vsel %vm338_vm0, %v889_v11, %v890_v12  ;;  %v893_v17 = vsel %vm422_vm7, %v890_v12, %v888_v25  ;;  %v1323_v18 = vld [vmem:[#allocation3 + $0x20] ss:$12 sps:$4 sm:$0xff]   ;;  %1041 = vmatprep.subr.bf16.mxu0 %v1232_v15 }
 0x308   : > { %v892_v19 = vsel %vm422_vm7, %v891_v16, %v886_v9  ;;  %897 = vst [vmem:[#allocation3 + $0x50] sm:$0xf] %v893_v17  ;;  %v901_v20 = vpop.permute.xlu0 %900  ;;  %v903_v22 = vpop.permute.xlu1 %902  ;;  %1042 = vmatpush1.bf16.msra.mxu0 %v1231_v13  ;;  %1284 = vmatpush3.bf16.msra.mxu1 %v1323_v18 }
 0x309   : > { %v905_v24 = vrot.slane %v901_v20, 4  ;;  %1285 = vmatprep.subr.bf16.mxu1 %v1337_v4 }
 0x30b   : > { %v906_v26 = vsel %vm338_vm0, %v904_v23, %v905_v24  ;;  %v1324_v21 = vld [vmem:[#allocation3 + $0x38] ss:$12 sps:$4 sm:$0xff]   ;;  %v908_v27 = vsel %vm438_vm8, %v905_v24, %v903_v22 }
 0x30c   : > { %v907_v25 = vsel %vm438_vm8, %v906_v26, %v901_v20  ;;  %v914_v28 = vpop.permute.xlu0 %913  ;;  %912 = vst [vmem:[#allocation3 + $0x5c] sm:$0xf] %v908_v27  ;;  %1286 = vmatpush3.bf16.msra.mxu1 %v1324_v21 }
 0x30d   : > { %v919_v30 = vrot.slane %v914_v28, 4  ;;  %v1234_v31 = vcombine.low %v892_v19, %v907_v25  ;;  %v1235_v33 = vcombine.high %v892_v19, %v907_v25  ;;  %1287 = vmatprep.subr.bf16.mxu1 %v1337_v4 }
 0x30f   : > { %v921_v35 = vsel %vm338_vm0, %v919_v30, %v920_v29  ;;  %1043 = vmatprep.subr.bf16.mxu0 %v1235_v33 }
 0x310   : > { %v922_v36 = vsel %vm454_vm9, %v921_v35, %v916_v10  ;;  %v918_v37 = vpop.permute.xlu0 %917  ;;  %1044 = vmatpush1.bf16.msra.mxu0 %v1234_v31 }
 0x311   : > { %v923_v38 = vsel %vm454_vm9, %v920_v29, %v918_v37  ;;  %v1238_v39 = vcombine.high %v922_v36, %v922_v36  ;;  %v1237_v40 = vcombine.low %v922_v36, %v922_v36 }
 0x312   : > { %927 = vst [vmem:[#allocation3 + $0x68] sm:$0xf] %v923_v38 }
 0x313   : > { %v1325_v41 = vld [vmem:[#allocation3 + $0x50] ss:$12 sps:$4 sm:$0xff]   ;;  %1240 = vmatprep.subr.msk.bf16.mxu0 %vm338_vm0, %v1238_v39  ;;  %v1029_v42 = vsel %vm338_vm0, %v1237_v40, 0 }
 0x314   : > { %1046 = vmatpush1.bf16.msra.mxu0 %v1029_v42  ;;  %1288 = vmatpush3.bf16.msra.mxu1 %v1325_v41 }
 0x315   : > { %1289 = vmatprep.subr.bf16.mxu1 %v1337_v4 }
 0x317   : > { %1241 = vmatmul.mubr.msk.bf16.vlgmr.msra.gmra.mrb[8].mxu0 %vm558_vm10, %v928_v44 }
 0x319   : > { %v1326_v45 = vld [vmem:[#allocation3 + $0x68] ss:$0 sps:$4 sm:$0xff]   ;;  %v951_v47 = vpop.permute.xlu1 %950 }
 0x31a   : > { %v1035_v46 = vsel %vm338_vm0, %v1326_v45, 0 }
 0x31b   : > { %1290 = vmatpush3.bf16.msra.mxu1 %v1035_v46 }
 0x31e   : > { %1292 = vmatmul.mubr.msk.bf16.vlgmr.msra.gmra.mrb[8].mxu1 %vm558_vm10, %v928_v44 }
 0x3ea   : > { %v1071_v7 = vpop.f32.mrb[8].mxu0 }
 0x3eb   : > { %v1072_v48 = vadd.f32 %v1071_v7, %v951_v47  ;;  %v1073_v49 = vpop.f32.mrb[9].mxu0 }
 0x3ec   : > { %v1074_v50 = vadd.f32 %v1073_v49, %v951_v47  ;;  %v1075_v51 = vpop.f32.mrb[10].mxu0 }
 0x3ed   : > { %v1118_v52 = vmax.f32 %v1072_v48, 0.0  ;;  %v1076_v53 = vpop.f32.mrb[11].mxu0 }
 0x3ee   : > { %v1119_v54 = vmax.f32 %v1074_v50, 0.0 }
 0x3ef   : > { %v1121_v4 = vadd.f32 %v1118_v52, %v1490_v32 }
 0x3f0   : > { %v1122_v55 = vadd.f32 %v1119_v54, %v1492_v34 }
 0x3f1   : > { %v1124_v56 = vadd.f32 %v1121_v4, %v1526_v63  ;;  %v1112_v58 = vpop.f32.mrb[8].mxu1 }
 0x3f2   : > { %v1125_v57 = vadd.f32 %v1122_v55, %v1529_v0  ;;  %v1113_v59 = vadd.f32 %v1112_v58, %v951_v47  ;;  %v1293_v60 = vpop.f32.mrb[9].mxu1 }
 0x3f3   : > { %1127 = vst [vmem:[%s324_s18] sm:$0xff] %v1124_v56  ;;  %v1115_v61 = vpop.f32.mrb[10].mxu1 }
 0x3f4   : > { %1128 = vst [vmem:[%s324_s18 + $0x8] sm:$0xff] %v1125_v57  ;;  %v1120_v62 = vmax.f32 %v1113_v59, 0.0  ;;  %v1294_v1 = vpop.f32.mrb[11].mxu1 }
 0x3f6   : > { %v1123_v32 = vadd.f32 %v1120_v62, %v1504_v43 }
 0x3f8   : > { %v1126_v2 = vadd.f32 %v1123_v32, %v1534_v14 }
 0x3fa   : > { %1129 = vst [vmem:[%s324_s18 + $0x10] sm:$0xff] %v1126_v2 }
 0x3fb PF: > { %s18_s27 = sadd.s32 1, %s1333_s27  }
 0x3fc   : > { %p15_p5 = scmp.ge.s32.totalorder %s18_s27, 4  }
 0x3fe   :  { %17 = sbr.rel (!%p15_p5) target bundleno = 1 (0x1), region = 85 }

</bundles_post_ra>
